<compile_context>
chip_gen: v6e
topology: v6e:2x2x1
jax: 0.10.0
libtpu: 0.0.40
codegen_flags: <defaults>
</compile_context>

<pallas_src>
import jax
import jax.numpy as jnp
from jax.experimental import pallas as pl
from jax.experimental.pallas import tpu as pltpu


def _round_up(x, m):
    return (x + m - 1) // m * m


def _choose_tile_b(batch, requested):
    """Lane-aligned (multiple of 128) batch tile; prefer >=2 grid steps when the batch
    allows it so the parallel grid axis can shard across v7x's two TensorCores."""
    t = max(128, (requested // 128) * 128)
    b128 = _round_up(max(batch, 1), 128)
    t = min(t, b128)
    if b128 // t < 2 and b128 >= 256:
        t = max(128, (b128 // 2) // 128 * 128)
    return t


def _qfunc_kernel(obs_ref, act_ref, w1o_ref, w1a_ref, b1_ref,
                  w2_ref, b2_ref, w3_ref, b3_ref, o_ref):
    """One batch tile of the Q MLP; batch lives on the 128-lane axis throughout."""
    # Layer 1: split-K over (obs, act) -- no concatenated input ever exists.
    h1 = jnp.dot(w1o_ref[...], obs_ref[...], preferred_element_type=jnp.float32)
    h1 = h1 + jnp.dot(w1a_ref[...], act_ref[...], preferred_element_type=jnp.float32)
    h1 = jnp.maximum(h1 + b1_ref[...], 0.0)                      # (H1, TB) f32
    # Layer 2 (bf16 MXU operands, f32 accumulate).
    h2 = jnp.dot(w2_ref[...], h1.astype(jnp.bfloat16),
                 preferred_element_type=jnp.float32)
    h2 = jnp.maximum(h2 + b2_ref[...], 0.0)                      # (H2, TB) f32
    # Layer 3 (H2 -> 1): VPU multiply + sublane reduce keeps the N=1 matmul off the MXU.
    q = jnp.sum(h2 * w3_ref[...], axis=0, keepdims=True) + b3_ref[0, 0]
    o_ref[...] = q.astype(o_ref.dtype)                           # (1, TB) lane-dense store


def mlp_q_function(obs, act, params, *, tile_b=256):
    """Pallas-backed forward of MLPQFunction.

    obs: (B, obs_dim) f32, act: (B, act_dim) f32
    params: (w1, b1, w2, b2, w3, b3) with w_i stored as (in_features, out_features)
    returns: (B,) float32
    """
    w1, b1, w2, b2, w3, b3 = params
    B, obs_dim = obs.shape
    act_dim = act.shape[1]
    H1, H2 = w1.shape[1], w2.shape[1]

    tile_b = _choose_tile_b(B, tile_b)
    b_pad = _round_up(B, tile_b)
    pad = b_pad - B

    # Layout plumbing (fuses into single XLA copies): batch -> lane axis, bf16 operands.
    obs_t = jnp.pad(obs, ((0, pad), (0, 0))).T.astype(jnp.bfloat16)   # (obs_dim, b_pad)
    act_t = jnp.pad(act, ((0, pad), (0, 0))).T.astype(jnp.bfloat16)   # (act_dim, b_pad)

    # Weight prep (tiny, one-time): (in,out) -> (out,in); W1 split by obs/act features.
    w1o = w1[:obs_dim].T.astype(jnp.bfloat16)        # (H1, obs_dim)
    w1a = w1[obs_dim:].T.astype(jnp.bfloat16)        # (H1, act_dim)
    w2t = w2.T.astype(jnp.bfloat16)                  # (H2, H1)
    w3c = w3.astype(jnp.float32)                     # (H2, 1)  -- used on the VPU in f32
    b1c = b1.reshape(H1, 1).astype(jnp.float32)      # (H1, 1)  -- broadcasts over lanes
    b2c = b2.reshape(H2, 1).astype(jnp.float32)      # (H2, 1)
    b3s = b3.reshape(1, 1).astype(jnp.float32)       # (1, 1)   -- scalar in SMEM

    grid = (b_pad // tile_b,)
    const = lambda i: (0, 0)   # resident weights/biases: same whole-array block every step
    # TODO(synk): constant-index weight blocks could be single-buffered (pl.Buffered(1))
    # to halve their VMEM footprint; irrelevant at H<=64 so left at the default.

    out = pl.pallas_call(
        _qfunc_kernel,
        out_shape=jax.ShapeDtypeStruct((1, b_pad), jnp.float32),
        grid_spec=pltpu.PrefetchScalarGridSpec(
            num_scalar_prefetch=0,
            grid=grid,
            in_specs=[
                pl.BlockSpec((obs_dim, tile_b), lambda i: (0, i)),  # obs tile (batch on lanes)
                pl.BlockSpec((act_dim, tile_b), lambda i: (0, i)),  # act tile
                pl.BlockSpec((H1, obs_dim), const),                 # W1[:obs_dim]^T
                pl.BlockSpec((H1, act_dim), const),                 # W1[obs_dim:]^T
                pl.BlockSpec((H1, 1), const),                       # b1 column
                pl.BlockSpec((H2, H1), const),                      # W2^T
                pl.BlockSpec((H2, 1), const),                       # b2 column
                pl.BlockSpec((H2, 1), const),                       # w3 column
                pl.BlockSpec(memory_space=pltpu.MemorySpace.SMEM),  # b3 scalar
            ],
            out_specs=pl.BlockSpec((1, tile_b), lambda i: (0, i)),  # lane-dense q row
        ),
        compiler_params=pltpu.CompilerParams(
            dimension_semantics=("parallel",),
        ),
    )(obs_t, act_t, w1o, w1a, b1c, w2t, b2c, w3c, b3s)

    return out[0, :B]                                             # (B,)


def init_params(key, obs_dim, act_dim, hidden_sizes):
    """Deterministic synthetic init (uniform +-1/sqrt(fan_in), PyTorch-Linear-like)."""
    sizes = [obs_dim + act_dim] + list(hidden_sizes) + [1]
    params = []
    for fan_in, fan_out in zip(sizes[:-1], sizes[1:]):
        key, kw, kb = jax.random.split(key, 3)
        bound = 1.0 / jnp.sqrt(float(fan_in))
        w = jax.random.uniform(kw, (fan_in, fan_out), jnp.float32, -bound, bound)
        b = jax.random.uniform(kb, (1, fan_out), jnp.float32, -bound, bound)
        params += [w, b]
    return tuple(params)


def reference_forward(obs, act, params):
    """Pure-JAX f32 reference for a sanity check."""
    w1, b1, w2, b2, w3, b3 = params
    x = jnp.concatenate([obs, act], axis=-1)
    h1 = jnp.maximum(x @ w1 + b1, 0.0)
    h2 = jnp.maximum(h1 @ w2 + b2, 0.0)
    q = h2 @ w3 + b3
    return jnp.squeeze(q, -1)


if __name__ == "__main__":
    obs_dim, act_dim = 12, 4
    hidden_sizes = (64, 64)
    B = 200   # deliberately not tile-aligned: exercises batch padding + a 2-step grid

    key = jax.random.PRNGKey(0)
    key, k_obs, k_act, k_par = jax.random.split(key, 4)
    obs = jax.random.normal(k_obs, (B, obs_dim), jnp.float32)
    act = jax.random.normal(k_act, (B, act_dim), jnp.float32)
    params = init_params(k_par, obs_dim, act_dim, hidden_sizes)

    q_fn = jax.jit(mlp_q_function)
    q = jax.block_until_ready(q_fn(obs, act, params))

    q_ref = reference_forward(obs, act, params)
    assert q.shape == (B,)
    # bf16 matmul operands with f32 accumulation: loose-but-meaningful tolerance vs f32 ref.
    assert jnp.allclose(q, q_ref, atol=5e-2, rtol=5e-2), float(jnp.max(jnp.abs(q - q_ref)))

    print("KERNEL_OK")
</pallas_src>

<mosaic_0001>
module attributes {stable_mosaic.version = 11 : i64} {
  func.func @_qfunc_kernel(%arg0: i32, %arg1: memref<12x128xbf16, #tpu.memory_space<vmem>>, %arg2: memref<4x128xbf16, #tpu.memory_space<vmem>>, %arg3: memref<64x12xbf16, #tpu.memory_space<vmem>>, %arg4: memref<64x4xbf16, #tpu.memory_space<vmem>>, %arg5: memref<64x1xf32, #tpu.memory_space<vmem>>, %arg6: memref<64x64xbf16, #tpu.memory_space<vmem>>, %arg7: memref<64x1xf32, #tpu.memory_space<vmem>>, %arg8: memref<64x1xf32, #tpu.memory_space<vmem>>, %arg9: memref<1x1xf32, #tpu.memory_space<smem>>, %arg10: memref<1x128xf32, #tpu.memory_space<vmem>>) attributes {dimension_semantics = [#tpu.dimension_semantics<parallel>], iteration_bounds = array<i64: 2>, scalar_prefetch = 0 : i64, scratch_operands = 0 : i64, tpu.core_type = #tpu.core_type<tc>, window_params = [{transform_indices = @transform_0, window_bounds = array<i64: 12, 128>}, {transform_indices = @transform_1, window_bounds = array<i64: 4, 128>}, {pipeline_mode = #tpu.pipeline_mode<synchronous>, transform_indices = @transform_2, window_bounds = array<i64: 64, 12>}, {pipeline_mode = #tpu.pipeline_mode<synchronous>, transform_indices = @transform_3, window_bounds = array<i64: 64, 4>}, {pipeline_mode = #tpu.pipeline_mode<synchronous>, transform_indices = @transform_4, window_bounds = array<i64: 64, 1>}, {pipeline_mode = #tpu.pipeline_mode<synchronous>, transform_indices = @transform_5, window_bounds = array<i64: 64, 64>}, {pipeline_mode = #tpu.pipeline_mode<synchronous>, transform_indices = @transform_6, window_bounds = array<i64: 64, 1>}, {pipeline_mode = #tpu.pipeline_mode<synchronous>, transform_indices = @transform_7, window_bounds = array<i64: 64, 1>}, {transform_indices = @transform_8, window_bounds = array<i64: 1, 1>}, {transform_indices = @transform_9, window_bounds = array<i64: 1, 128>}]} {
    %c0 = arith.constant 0 : index
    %c0_0 = arith.constant 0 : index
    %0 = vector.load %arg3[%c0, %c0_0] : memref<64x12xbf16, #tpu.memory_space<vmem>>, vector<64x12xbf16>
    %c0_1 = arith.constant 0 : index
    %c0_2 = arith.constant 0 : index
    %1 = vector.load %arg1[%c0_1, %c0_2] : memref<12x128xbf16, #tpu.memory_space<vmem>>, vector<12x128xbf16>
    %cst = arith.constant dense<0.000000e+00> : vector<64x128xf32>
    %2 = tpu.matmul %0, %1, %cst {dimension_numbers = #tpu.dot_dimension_numbers<[1], [0], [0], [1], [0, 0, 1, 1], [], []>} : vector<64x12xbf16>, vector<12x128xbf16>, vector<64x128xf32> -> vector<64x128xf32>
    %c0_3 = arith.constant 0 : index
    %c0_4 = arith.constant 0 : index
    %3 = vector.load %arg4[%c0_3, %c0_4] : memref<64x4xbf16, #tpu.memory_space<vmem>>, vector<64x4xbf16>
    %c0_5 = arith.constant 0 : index
    %c0_6 = arith.constant 0 : index
    %4 = vector.load %arg2[%c0_5, %c0_6] : memref<4x128xbf16, #tpu.memory_space<vmem>>, vector<4x128xbf16>
    %cst_7 = arith.constant dense<0.000000e+00> : vector<64x128xf32>
    %5 = tpu.matmul %3, %4, %cst_7 {dimension_numbers = #tpu.dot_dimension_numbers<[1], [0], [0], [1], [0, 0, 1, 1], [], []>} : vector<64x4xbf16>, vector<4x128xbf16>, vector<64x128xf32> -> vector<64x128xf32>
    %6 = arith.addf %2, %5 : vector<64x128xf32>
    %c0_8 = arith.constant 0 : index
    %c0_9 = arith.constant 0 : index
    %7 = vector.load %arg5[%c0_8, %c0_9] : memref<64x1xf32, #tpu.memory_space<vmem>>, vector<64x1xf32>
    %8 = vector.broadcast %7 : vector<64x1xf32> to vector<64x128xf32>
    %9 = arith.addf %6, %8 : vector<64x128xf32>
    %cst_10 = arith.constant 0.000000e+00 : f32
    %10 = vector.broadcast %cst_10 : f32 to vector<64x128xf32>
    %11 = arith.maximumf %9, %10 : vector<64x128xf32>
    %c0_11 = arith.constant 0 : index
    %c0_12 = arith.constant 0 : index
    %12 = vector.load %arg6[%c0_11, %c0_12] : memref<64x64xbf16, #tpu.memory_space<vmem>>, vector<64x64xbf16>
    %13 = arith.truncf %11 : vector<64x128xf32> to vector<64x128xbf16>
    %cst_13 = arith.constant dense<0.000000e+00> : vector<64x128xf32>
    %14 = tpu.matmul %12, %13, %cst_13 {dimension_numbers = #tpu.dot_dimension_numbers<[1], [0], [0], [1], [0, 0, 1, 1], [], []>} : vector<64x64xbf16>, vector<64x128xbf16>, vector<64x128xf32> -> vector<64x128xf32>
    %c0_14 = arith.constant 0 : index
    %c0_15 = arith.constant 0 : index
    %15 = vector.load %arg7[%c0_14, %c0_15] : memref<64x1xf32, #tpu.memory_space<vmem>>, vector<64x1xf32>
    %16 = vector.broadcast %15 : vector<64x1xf32> to vector<64x128xf32>
    %17 = arith.addf %14, %16 : vector<64x128xf32>
    %cst_16 = arith.constant 0.000000e+00 : f32
    %18 = vector.broadcast %cst_16 : f32 to vector<64x128xf32>
    %19 = arith.maximumf %17, %18 : vector<64x128xf32>
    %c0_17 = arith.constant 0 : index
    %c0_18 = arith.constant 0 : index
    %20 = vector.load %arg8[%c0_17, %c0_18] : memref<64x1xf32, #tpu.memory_space<vmem>>, vector<64x1xf32>
    %21 = vector.broadcast %20 : vector<64x1xf32> to vector<64x128xf32>
    %22 = arith.mulf %19, %21 : vector<64x128xf32>
    %cst_19 = arith.constant dense<0.000000e+00> : vector<128xf32>
    %23 = vector.multi_reduction <add>, %22, %cst_19 [0] : vector<64x128xf32> to vector<128xf32>
    %24 = vector.shape_cast %23 : vector<128xf32> to vector<1x128xf32>
    %c0_20 = arith.constant 0 : index
    %c0_21 = arith.constant 0 : index
    %25 = memref.load %arg9[%c0_20, %c0_21] : memref<1x1xf32, #tpu.memory_space<smem>>
    %26 = vector.broadcast %25 : f32 to vector<1x128xf32>
    %27 = arith.addf %24, %26 : vector<1x128xf32>
    %c0_22 = arith.constant 0 : index
    %c0_23 = arith.constant 0 : index
    %28 = vector.load %arg10[%c0_22, %c0_23] : memref<1x128xf32, #tpu.memory_space<vmem>>, vector<1x128xf32>
    tpu.vector_store %arg10[%c0_22, %c0_23], %27 {strides = array<i32>} : memref<1x128xf32, #tpu.memory_space<vmem>>, vector<1x128xf32>,
    return
  }
  func.func @transform_0(%arg0: i32) -> (i32, i32) {
    %c0_i32 = arith.constant 0 : i32
    %c0_i32_0 = arith.constant 0 : i32
    return %c0_i32, %arg0 : i32, i32
  }
  func.func @transform_1(%arg0: i32) -> (i32, i32) {
    %c0_i32 = arith.constant 0 : i32
    %c0_i32_0 = arith.constant 0 : i32
    return %c0_i32, %arg0 : i32, i32
  }
  func.func @transform_2(%arg0: i32) -> (i32, i32) {
    %c0_i32 = arith.constant 0 : i32
    %c0_i32_0 = arith.constant 0 : i32
    %c0_i32_1 = arith.constant 0 : i32
    return %c0_i32, %c0_i32_0 : i32, i32
  }
  func.func @transform_3(%arg0: i32) -> (i32, i32) {
    %c0_i32 = arith.constant 0 : i32
    %c0_i32_0 = arith.constant 0 : i32
    %c0_i32_1 = arith.constant 0 : i32
    return %c0_i32, %c0_i32_0 : i32, i32
  }
  func.func @transform_4(%arg0: i32) -> (i32, i32) {
    %c0_i32 = arith.constant 0 : i32
    %c0_i32_0 = arith.constant 0 : i32
    %c0_i32_1 = arith.constant 0 : i32
    return %c0_i32, %c0_i32_0 : i32, i32
  }
  func.func @transform_5(%arg0: i32) -> (i32, i32) {
    %c0_i32 = arith.constant 0 : i32
    %c0_i32_0 = arith.constant 0 : i32
    %c0_i32_1 = arith.constant 0 : i32
    return %c0_i32, %c0_i32_0 : i32, i32
  }
  func.func @transform_6(%arg0: i32) -> (i32, i32) {
    %c0_i32 = arith.constant 0 : i32
    %c0_i32_0 = arith.constant 0 : i32
    %c0_i32_1 = arith.constant 0 : i32
    return %c0_i32, %c0_i32_0 : i32, i32
  }
  func.func @transform_7(%arg0: i32) -> (i32, i32) {
    %c0_i32 = arith.constant 0 : i32
    %c0_i32_0 = arith.constant 0 : i32
    %c0_i32_1 = arith.constant 0 : i32
    return %c0_i32, %c0_i32_0 : i32, i32
  }
  func.func @transform_8(%arg0: i32) -> (i32, i32) {
    %c0_i32 = arith.constant 0 : i32
    %c0_i32_0 = arith.constant 0 : i32
    %c0_i32_1 = arith.constant 0 : i32
    return %c0_i32, %c0_i32_0 : i32, i32
  }
  func.func @transform_9(%arg0: i32) -> (i32, i32) {
    %c0_i32 = arith.constant 0 : i32
    %c0_i32_0 = arith.constant 0 : i32
    return %c0_i32, %arg0 : i32, i32
  }
}

</mosaic_0001>

<bundles_post_ra>
// kernel: mlp_q_function.1
= control target key start
LH: loop header
LB: loop body
LE: loop exit
PB: predicated region body
PF: predicated region fallthrough
CT: control target
= control target key end

     0   :  { %s1507_s0 = inlined_call_operand.vmem [shape: bf16[12,256], index: 0, kind: input, shape index: {}]   ;;  %s1508_s1 = inlined_call_operand.vmem [shape: bf16[4,256], index: 1, kind: input, shape index: {}]   ;;  %s1509_s2 = inlined_call_operand.vmem [shape: bf16[64,12], index: 2, kind: input, shape index: {}]   ;;  %s1510_s3 = inlined_call_operand.vmem [shape: bf16[64,4], index: 3, kind: input, shape index: {}]   ;;  %s1511_s4 = inlined_call_operand.vmem [shape: f32[64,1], index: 4, kind: input, shape index: {}]   ;;  %s1512_s5 = inlined_call_operand.vmem [shape: bf16[64,64], index: 5, kind: input, shape index: {}]   ;;  %s1513_s6 = inlined_call_operand.vmem [shape: f32[64,1], index: 6, kind: input, shape index: {}]   ;;  %s1514_s7 = inlined_call_operand.vmem [shape: f32[64,1], index: 7, kind: input, shape index: {}]   ;;  %s1515_s8 = inlined_call_operand.<no memory space> [shape: f32[1,1], index: 8, kind: input, shape index: {}]   ;;  %s1516_s9 = inlined_call_operand.hbm [shape: f32[1,256], index: 9, kind: output, shape index: {}]  }
   0x1   :  { %14 = sst [smem:[#allocation2]] %s1515_s8 }
   0x2   :  { %15 = vsyncpa [#allocation5], 0 }
   0x3   :  { %17 = vsyncpa [#allocation5 + $0x1], 0  ;;  %s1285_s11 = smov 0   ;;  %s1287_s12 = smov 0  }
   0x4   :  { %s1289_s13 = smov 0   ;;  %s1291_s14 = smov 0  }
   0x5 LB: > { %s1306_s8 = sadd.s32 4294967295, %s1228_s14   ;;  %s1013_s15 = sadd.s32 4294967294, %s1228_s14   ;;  %s1228_s14 = sphi %s1291_s14, %s1524_s14   ;;  %s1224_s13 = sphi %s1289_s13, %s1523_s13   ;;  %s1220_s12 = sphi %s1287_s12, %s1522_s12   ;;  %s1216_s11 = sphi %s1285_s11, %s1521_s11  }
   0x6   : > { %s1310_s16 = sadd.s32 1, %s1228_s14   ;;  %s30_s17 = sadd.s32 1, %s1224_s13 }
   0x7   : > { %s27_s18 = ssub.s32 %s1228_s14, %s1310_s16  ;;  %p37_p0 = scmp.ne.s32.totalorder %s1224_s13, %s1220_s12 }
   0x8   : > { %p28_p1 = scmp.eq.s32.totalorder %s27_s18, 0  ;;  %p38_p2 = scmp.eq.s32.totalorder %s1228_s14, 0 }
   0x9   : > { %p240_p3 = scmp.eq.s32.totalorder %s1306_s8, 1  ;;  %p245_p4 = scmp.ne.s32.totalorder %s1220_s12, %s1216_s11 }
   0xa   : > { %s1322_s19 = scalar_select %p28_p1, %s1224_s13, %s30_s17  }
   0xb   : > { %p39_p5 = por %p38_p2, %p37_p0  ;;  %p1324_p6 = por %p240_p3, %p37_p0 }
   0xc   : > { %p246_p7 = scmp.eq.s32.totalorder %s1013_s15, 1  ;;  %p1517_p9 = scmp.ge.s32.totalorder %s1228_s14, 2 }
   0xe   : > { %p1328_p8 = por %p246_p7, %p245_p4  ;;  %283 = sbr.rel (%p1517_p9) target bundleno = 24 (0x18), region = 44 }
  0x13   : > { %286 = sbr.rel (!%p39_p5) target bundleno = 24 (0x18), region = 48  ;;  %s288_s22 = sand.u32 (%p39_p5), 1, %s1224_s13  }
  0x14   : > { %s1017_s23 = sshll.u32 (%p39_p5), %s1228_s14, 2  ;;  %s1016_s24 = sshll.u32 (%p39_p5), %s288_s22, 3 }
  0x15   : > { %s292_s27 = scalar_lea.vmem (%p39_p5), %s1507_s0, %s1017_s23  ;;  %s290_s28 = scalar_lea.vmem (%p39_p5), [#allocation3], %s1016_s24 }
  0x16   : > { %v309_v0 = vld [vmem:[%s292_s27] sm:$0xf] (%p39_p5)  ;;  %v311_v1 = vld [vmem:[%s292_s27 + $0x8] sm:$0xf] (%p39_p5) }
  0x17   : > { %310 = vst [vmem:[%s290_s28] sm:$0xf] (%p39_p5), %v309_v0  ;;  %312 = vst [vmem:[%s290_s28 + $0x4] sm:$0xf] (%p39_p5), %v311_v1 }
  0x18 PF: > { %p1018_p10 = scmp.ge.s32.totalorder %s1228_s14, 1  ;;  %p346_p11 = scmp.lt.s32.totalorder %s1228_s14, 3 }
  0x1a   : > { %p347_p12 = pnand %p1018_p10, %p346_p11 }
  0x1b   : > { %s1343_s29 = sand.u32 (!%p347_p12), 1, %s1220_s12   ;;  %p391_p13 = scmp.lt.s32.totalorder (!%p347_p12), %s1306_s8, 1 }
  0x1c   : > { %350 = sbr.rel (%p347_p12) target bundleno = 517 (0x205), region = 93  ;;  %s1019_s30 = sshll.u32 (!%p347_p12), %s1343_s29, 3 }
  0x1d   : > { %s355_s22 = scalar_lea.vmem (!%p347_p12), [#allocation3], %s1019_s30  ;;  %s923_s24 = sld [smem:[#allocation2]] (!%p347_p12) }
  0x1e   : > { %s1046_s25 = sshll.u32 (!%p347_p12), %s1306_s8, 4  ;;  %s1231_s18 = smov (!%p347_p12), [#allocation4]  }
  0x1f   : > { %s938_s10 = scalar_lea.hbm (!%p347_p12), %s1516_s9, %s1046_s25 }
  0x21   : > { %vm555_vm0 = vcmask 1045504   ;;  %v1156_v2 = vld [vmem:[%s1509_s2] sm:$0xff]   ;;  %vm542_vm1 = vcmask 97280   ;;  %vm435_vm2 = vcmask 31744   ;;  %s392_s23 = scalar_select %p391_p13, %s1306_s8, 1  ;;  %vm448_vm3 = vcmask 1041408  }
  0x22   : > { %v1157_v3 = vld [vmem:[%s1510_s3] sm:$0xff]   ;;  %1079 = vmatprep.mubr.msk.bf16.mxu1 %vm542_vm1, %v1156_v2  ;;  %v1158_v6 = vld [vmem:[%s1509_s2 + $0x8] sm:$0xff]   ;;  %v1160_v7 = vld [vmem:[%s1509_s2 + $0x10] sm:$0xff]   ;;  %v1230_v9 = vmov 0   ;;  %vm768_vm4 = vcmask 523264  }
  0x23   : > { %v1155_v4 = vld [vmem:[%s355_s22] sm:$0x3f]   ;;  %1069 = vmatprep.mubr.msk.bf16.mxu0 %vm435_vm2, %v1157_v3  ;;  %s1020_s26 = sshll.u32 %s392_s23, 1  ;;  %1153 = vset.pattern.permute.xlu0 %v1230_v9  ;;  %v1161_v12 = vld [vmem:[%s1510_s3 + $0x10] sm:$0xff]   ;;  %v631_v15 = vld [vmem:[%s1511_s4 + $0x38] sm:$0xff]  ;;  %s1172_s22 = sshll.u32 %s1231_s18, 4  ;;  %s1173_s22 = int_to_ptr.vmem [resolvable:$false] %s1172_s22 }
  0x24   : > { %1112 = vmatprep.subr.msk.bf16.mxu1 %vm555_vm0, %v1155_v4  ;;  %v557_v5 = vsel %vm555_vm0, %v1155_v4, 0  ;;  %s394_s15 = scalar_lea.vmem %s1508_s1, %s1020_s26  ;;  %1154 = vset.pattern.permute.xlu1 %v1230_v9  ;;  %v1159_v11 = vld [vmem:[%s1510_s3 + $0x8] sm:$0xff]   ;;  %v630_v13 = vld [vmem:[%s1511_s4 + $0x30] sm:$0xff]  ;;  %v628_v14 = vld [vmem:[%s1511_s4 + $0x20] sm:$0xff]  ;;  %s390_s26 = scalar_lea.vmem [#allocation4], %s1343_s29 }
  0x25   : > { %1078 = vmatpush3.bf16.msra.mxu1 %v557_v5  ;;  %v414_v8 = vld [vmem:[%s394_s15] sm:$0x3]  ;;  %664 = vperm.xlu0 %1153, %v630_v13   ;;  %v1162_v16 = vld [vmem:[%s1509_s2 + $0x18] sm:$0xff]   ;;  %v629_v17 = vld [vmem:[%s1511_s4 + $0x28] sm:$0xff]  ;;  %s940_s27 = sshll.u32 %s390_s26, 4  ;;  %s928_s15 = scalar_lea.sflag [#allocation5], %s1343_s29  ;;  %s941_s27 = int_to_ptr.vmem [resolvable:$true] %s940_s27 }
  0x26   : > { %1111 = vmatprep.subr.msk.bf16.mxu0 %vm448_vm3, %v414_v8  ;;  %v450_v10 = vsel %vm448_vm3, %v414_v8, 0  ;;  %654 = vperm.xlu1 %1154, %v628_v14   ;;  %v626_v18 = vld [vmem:[%s1511_s4 + $0x10] sm:$0xff]  ;;  %v1163_v19 = vld [vmem:[%s1510_s3 + $0x18] sm:$0xff]   ;;  %v624_v21 = vld [vmem:[%s1511_s4] sm:$0xff]  ;;  %s1168_s17 = scalar_lea.vmem %s941_s27, 16  ;;  %s1174_s8 = scalar_lea.vmem %s1173_s22, 32 }
  0x27   : > { %1068 = vmatpush3.bf16.msra.mxu0 %v450_v10  ;;  %v627_v20 = vld [vmem:[%s1511_s4 + $0x18] sm:$0xff]  ;;  %v625_v22 = vld [vmem:[%s1511_s4 + $0x8] sm:$0xff]  ;;  %v700_v23 = vld [vmem:[%s1513_s6] sm:$0xff]  ;;  %p1169_p0 = scmp.ne.s32.totalorder %s941_s27, %s1168_s17  ;;  %p1175_p3 = scmp.lt.s32.totalorder %s941_s27, %s1173_s22 }
  0x28   : > { %1080 = vmatmul.mubr.msk.bf16.vlgmr.msra.gmra.mxu1 %vm542_vm1, %v1158_v6  ;;  %v701_v24 = vld [vmem:[%s1513_s6 + $0x8] sm:$0xff]  ;;  %v702_v25 = vld [vmem:[%s1513_s6 + $0x10] sm:$0xff]  ;;  %v703_v26 = vld [vmem:[%s1513_s6 + $0x18] sm:$0xff]  ;;  %p1176_p4 = scmp.lt.s32.totalorder %s1174_s8, %s1168_s17 }
  0x29   : > { %1083 = vmatprep.mubr.msk.bf16.mxu1 %vm542_vm1, %v1160_v7  ;;  %669 = vperm.xlu0 %1153, %v631_v15   ;;  %v854_v27 = vld [vmem:[%s1514_s7] sm:$0xff]  ;;  %v855_v28 = vld [vmem:[%s1514_s7 + $0x8] sm:$0xff]  ;;  %v856_v30 = vld [vmem:[%s1514_s7 + $0x10] sm:$0xff]  ;;  %p1170_p1 = pnand %p1169_p0, %p1324_p6 }
  0x2a   : > { %1070 = vmatmul.mubr.msk.bf16.vlgmr.msra.gmra.mxu0 %vm435_vm2, %v1159_v11  ;;  %659 = vperm.xlu1 %1154, %v629_v17   ;;  %v704_v29 = vld [vmem:[%s1513_s6 + $0x20] sm:$0xff]  ;;  %v705_v31 = vld [vmem:[%s1513_s6 + $0x28] sm:$0xff]  ;;  %v857_v32 = vld [vmem:[%s1514_s7 + $0x18] sm:$0xff]  ;;  %p1177_p5 = por %p1176_p4, %p1175_p3 }
  0x2b   : > { %1073 = vmatprep.mubr.msk.bf16.mxu0 %vm435_vm2, %v1161_v12  ;;  %v706_v33 = vld [vmem:[%s1513_s6 + $0x30] sm:$0xff]  ;;  %v858_v34 = vld [vmem:[%s1514_s7 + $0x20] sm:$0xff]  ;;  %v707_v35 = vld [vmem:[%s1513_s6 + $0x38] sm:$0xff]  ;;  %p1171_p2 = pneg %p1170_p1 }
  0x2c   : > { %v859_v36 = vld [vmem:[%s1514_s7 + $0x28] sm:$0xff]  ;;  %v860_v37 = vld [vmem:[%s1514_s7 + $0x30] sm:$0xff]  ;;  %v861_v38 = vld [vmem:[%s1514_s7 + $0x38] sm:$0xff] }
  0x2d   : > { %644 = vperm.xlu0 %1153, %v626_v18   ;;  %v1164_v39 = vld [vmem:[%s1512_s5] sm:$0xff]   ;;  %v1165_v40 = vld [vmem:[%s1512_s5 + $0x10] sm:$0xff]   ;;  %p1178_p7 = pnand %p1177_p5, %p1171_p2 }
  0x2e   : > { %649 = vperm.xlu1 %1154, %v627_v20  }
  0x30   : > { %1084 = vmatmul.mubr.msk.bf16.gmra.mxu1 %vm542_vm1, %v1162_v16 }
  0x31   : > { %634 = vperm.xlu0 %1153, %v624_v21   ;;  %1099 = vmatprep.mubr.msk.bf16.mxu1 %vm768_vm4, %v1165_v40 }
  0x32   : > { %1074 = vmatmul.mubr.msk.bf16.gmra.mxu0 %vm435_vm2, %v1163_v19  ;;  %639 = vperm.xlu1 %1154, %v625_v22  }
  0x33   : > { %1095 = vmatprep.mubr.msk.bf16.mxu0 %vm768_vm4, %v1164_v39 }
  0x35   : > { %710 = vperm.xlu0 %1153, %v700_v23  }
  0x36   : > { %715 = vperm.xlu1 %1154, %v701_v24  }
  0x39   : > { %720 = vperm.xlu0 %1153, %v702_v25  }
  0x3a   : > { %725 = vperm.xlu1 %1154, %v703_v26  }
  0x3d   : > { %864 = vperm.xlu0 %1153, %v854_v27  }
  0x3e   : > { %869 = vperm.xlu1 %1154, %v855_v28  }
  0x41   : > { %730 = vperm.xlu0 %1153, %v704_v29   ;;  %v1166_v29 = vld [vmem:[%s1512_s5 + $0x8] sm:$0xff]  }
  0x42   : > { %874 = vperm.xlu1 %1154, %v856_v30   ;;  %v1167_v30 = vld [vmem:[%s1512_s5 + $0x18] sm:$0xff]  }
  0x45   : > { %735 = vperm.xlu0 %1153, %v705_v31  }
  0x46   : > { %879 = vperm.xlu1 %1154, %v857_v32  }
  0x49   : > { %740 = vperm.xlu0 %1153, %v706_v33  }
  0x4a   : > { %884 = vperm.xlu1 %1154, %v858_v34  }
  0x4d   : > { %745 = vperm.xlu0 %1153, %v707_v35  }
  0x4e   : > { %889 = vperm.xlu1 %1154, %v859_v36  }
  0x51   : > { %894 = vperm.xlu0 %1153, %v860_v37  }
  0x52   : > { %899 = vperm.xlu1 %1154, %v861_v38  }
  0xa0   : > { %v665_v48 = vpop.permute.xlu0 %664 }
  0xa1   : > { %v655_v45 = vpop.permute.xlu1 %654 }
  0xa4   : > { %v670_v55 = vpop.permute.xlu0 %669 }
  0xa5   : > { %v660_v53 = vpop.permute.xlu1 %659 }
  0xa8   : > { %v645_v7 = vpop.permute.xlu0 %644 }
  0xa9   : > { %v650_v62 = vpop.permute.xlu1 %649 }
  0xac   : > { %v635_v22 = vpop.permute.xlu0 %634 }
  0xad   : > { %v640_v18 = vpop.permute.xlu1 %639 }
  0xb0   : > { %v711_v31 = vpop.permute.xlu0 %710 }
  0xb1   : > { %v716_v32 = vpop.permute.xlu1 %715 }
  0xb4   : > { %v721_v33 = vpop.permute.xlu0 %720 }
  0xb5   : > { %v726_v34 = vpop.permute.xlu1 %725 }
  0xb8   : > { %v865_v35 = vpop.permute.xlu0 %864 }
  0xb9   : > { %v870_v36 = vpop.permute.xlu1 %869 }
  0xbc   : > { %v731_v37 = vpop.permute.xlu0 %730 }
  0xbd   : > { %v875_v38 = vpop.permute.xlu1 %874 }
  0xe8   : > { %v1081_v41 = vpop.f32.mrf.mxu1 }
  0xea   : > { %v593_v42 = vpop.f32.mrf.mxu1  ;;  %v1071_v43 = vpop.f32.mrf.mxu0 }
  0xeb   : > { %v602_v1 = vadd.f32 %v1081_v41, %v1071_v43  ;;  %v736_v41 = vpop.permute.xlu0 %735 }
  0xec   : > { %v1082_v44 = vpop.f32.mrf.mxu1  ;;  %v486_v46 = vpop.f32.mrf.mxu0 }
  0xed   : > { %v674_v13 = vadd.f32 %v645_v7, %v602_v1  ;;  %v594_v14 = vadd.f32 %v593_v42, %v486_v46 }
  0xee   : > { %v596_v47 = vpop.f32.mrf.mxu1  ;;  %v1072_v49 = vpop.f32.mrf.mxu0 }
  0xef   : > { %v605_v60 = vadd.f32 %v1082_v44, %v1072_v49  ;;  %v682_v23 = vmax.f32 %v674_v13, 0.0  ;;  %v672_v24 = vadd.f32 %v635_v22, %v594_v14  ;;  %v880_v44 = vpop.permute.xlu1 %879 }
  0xf0   : > { %v1085_v50 = vpop.f32.mrf.mxu1  ;;  %v489_v51 = vpop.f32.mrf.mxu0 }
  0xf1   : > { %v675_v8 = vadd.f32 %v650_v62, %v605_v60  ;;  %v597_v9 = vadd.f32 %v596_v47, %v489_v51  ;;  %v680_v27 = vmax.f32 %v672_v24, 0.0 }
  0xf2   : > { %v609_v52 = vpop.f32.mrf.mxu1  ;;  %v1075_v54 = vpop.f32.mrf.mxu0 }
  0xf3   : > { %v618_v56 = vadd.f32 %v1085_v50, %v1075_v54  ;;  %v683_v19 = vmax.f32 %v675_v8, 0.0  ;;  %v673_v20 = vadd.f32 %v640_v18, %v597_v9 }
  0xf4   : > { %v502_v57 = vpop.f32.mrf.mxu0  ;;  %v1086_v58 = vpop.f32.mrf.mxu1 }
  0xf5   : > { %v610_v59 = vadd.f32 %v609_v52, %v502_v57  ;;  %v678_v63 = vadd.f32 %v665_v48, %v618_v56  ;;  %v697_v25 = vpack.c.bf16 %v683_v19, %v682_v23  ;;  %v681_v26 = vmax.f32 %v673_v20, 0.0 }
  0xf6   : > { %v1076_v61 = vpop.f32.mrf.mxu0  ;;  %v612_v2 = vpop.f32.mrf.mxu1 }
  0xf7   : > { %v621_v0 = vadd.f32 %v1086_v58, %v1076_v61  ;;  %v676_v4 = vadd.f32 %v655_v45, %v610_v59  ;;  %v686_v10 = vmax.f32 %v678_v63, 0.0  ;;  %v696_v28 = vpack.c.bf16 %v681_v26, %v680_v27  ;;  %v885_v58 = vpop.permute.xlu1 %884 }
  0xf8   : > { %v505_v3 = vpop.f32.mrf.mxu0  ;;  %v924_v27 = vstv %s923_s24 }
  0xf9   : > { %v679_v5 = vadd.f32 %v670_v55, %v621_v0  ;;  %v613_v6 = vadd.f32 %v612_v2, %v505_v3  ;;  %v684_v15 = vmax.f32 %v676_v4, 0.0 }
  0xfb   : > { %v687_v11 = vmax.f32 %v679_v5, 0.0  ;;  %v677_v12 = vadd.f32 %v660_v53, %v613_v6  ;;  %v741_v53 = vpop.permute.xlu0 %740  ;;  %v890_v8 = vpop.permute.xlu1 %889 }
  0xfd   : > { %v699_v16 = vpack.c.bf16 %v687_v11, %v686_v10  ;;  %v685_v17 = vmax.f32 %v677_v12, 0.0 }
  0xff   : > { %v698_v21 = vpack.c.bf16 %v685_v17, %v684_v15  ;;  %1087 = vmatprep.subr.bf16.mxu0 %v699_v16  ;;  %1103 = vmatprep.subr.bf16.mxu1 %v699_v16  ;;  %v746_v3 = vpop.permute.xlu0 %745  ;;  %v900_v18 = vpop.permute.xlu1 %899 }
 0x100   : > { %1088 = vmatpush3.bf16.msra.mxu0 %v699_v16  ;;  %1107 = vmatpush3.bf16.msra.mxu1 %v699_v16 }
 0x101   : > { %1089 = vmatprep.subr.bf16.mxu0 %v698_v21  ;;  %1104 = vmatprep.subr.bf16.mxu1 %v698_v21 }
 0x103   : > { %v895_v15 = vpop.permute.xlu0 %894 }
 0x104   : > { %1090 = vmatpush3.bf16.msra.mxu0 %v698_v21  ;;  %1108 = vmatpush3.bf16.msra.mxu1 %v698_v21 }
 0x105   : > { %1091 = vmatprep.subr.bf16.mxu0 %v697_v25  ;;  %1105 = vmatprep.subr.bf16.mxu1 %v697_v25 }
 0x108   : > { %1092 = vmatpush3.bf16.msra.mxu0 %v697_v25  ;;  %1109 = vmatpush3.bf16.msra.mxu1 %v697_v25 }
 0x109   : > { %1093 = vmatprep.subr.bf16.mxu0 %v696_v28  ;;  %1106 = vmatprep.subr.bf16.mxu1 %v696_v28 }
 0x10c   : > { %1094 = vmatpush3.bf16.msra.mxu0 %v696_v28  ;;  %1110 = vmatpush3.bf16.msra.mxu1 %v696_v28 }
 0x10f   : > { %1096 = vmatmul.mubr.msk.bf16.vlgmr.msra.gmra.mxu0 %vm768_vm4, %v1166_v29  ;;  %1100 = vmatmul.mubr.msk.bf16.vlgmr.msra.gmra.mxu1 %vm768_vm4, %v1167_v30 }
 0x1cf   : > { %v1097_v39 = vpop.f32.mrf.mxu0  ;;  %v1101_v40 = vpop.f32.mrf.mxu1 }
 0x1d0   : > { %v824_v48 = vadd.f32 %v1097_v39, %v721_v33  ;;  %v840_v0 = vadd.f32 %v1101_v40, %v741_v53 }
 0x1d1   : > { %v815_v42 = vpop.f32.mrf.mxu0  ;;  %v831_v43 = vpop.f32.mrf.mxu1 }
 0x1d2   : > { %v816_v45 = vadd.f32 %v815_v42, %v711_v31  ;;  %v848_v55 = vmax.f32 %v824_v48, 0.0  ;;  %v832_v56 = vadd.f32 %v831_v43, %v731_v37  ;;  %v852_v9 = vmax.f32 %v840_v0, 0.0 }
 0x1d3   : > { %v1098_v46 = vpop.f32.mrf.mxu0  ;;  %v1102_v47 = vpop.f32.mrf.mxu1 }
 0x1d4   : > { %v846_v50 = vmax.f32 %v816_v45, 0.0  ;;  %v827_v51 = vadd.f32 %v1098_v46, %v726_v34  ;;  %v904_v63 = vmul.f32 %v875_v38, %v848_v55  ;;  %v850_v1 = vmax.f32 %v832_v56, 0.0 }
 0x1d5   : > { %v818_v49 = vpop.f32.mrf.mxu0  ;;  %v834_v54 = vpop.f32.mrf.mxu1  ;;  %v843_v5 = vadd.f32 %v1102_v47, %v746_v3  ;;  %v908_v16 = vmul.f32 %v895_v15, %v852_v9 }
 0x1d6   : > { %v819_v52 = vadd.f32 %v818_v49, %v716_v32  ;;  %v902_v59 = vmul.f32 %v865_v35, %v846_v50  ;;  %v849_v60 = vmax.f32 %v827_v51, 0.0  ;;  %v835_v62 = vadd.f32 %v834_v54, %v736_v41 }
 0x1d7   : > { %v906_v10 = vmul.f32 %v885_v58, %v850_v1  ;;  %v853_v12 = vmax.f32 %v843_v5, 0.0 }
 0x1d8   : > { %v847_v57 = vmax.f32 %v819_v52, 0.0  ;;  %v905_v4 = vmul.f32 %v880_v44, %v849_v60  ;;  %v851_v7 = vmax.f32 %v835_v62, 0.0 }
 0x1d9   : > { %v909_v19 = vmul.f32 %v900_v18, %v853_v12 }
 0x1da   : > { %v903_v61 = vmul.f32 %v870_v36, %v847_v57  ;;  %v907_v13 = vmul.f32 %v890_v8, %v851_v7 }
 0x1dc   : > { %v910_v2 = vadd.f32 %v903_v61, %v902_v59 }
 0x1de   : > { %v911_v6 = vadd.f32 %v910_v2, %v904_v63 }
 0x1e0   : > { %v912_v11 = vadd.f32 %v911_v6, %v905_v4 }
 0x1e2   : > { %v913_v14 = vadd.f32 %v912_v11, %v906_v10 }
 0x1e4   : > { %v914_v17 = vadd.f32 %v913_v14, %v907_v13 }
 0x1e6   : > { %v915_v20 = vadd.f32 %v914_v17, %v908_v16 }
 0x1e8   : > { %v916_v21 = vadd.f32 %v915_v20, %v909_v19 }
 0x1ea   : > { %v917_v22 = vrot.slane %v916_v21, 4 }
 0x1ec   : > { %v918_v23 = vadd.f32 %v917_v22, %v916_v21 }
 0x1ee   : > { %v919_v24 = vrot.slane %v918_v23, 2 }
 0x1f0   : > { %v920_v25 = vadd.f32 %v919_v24, %v918_v23 }
 0x1f2   : > { %v921_v26 = vrot.slane %v920_v25, 1 }
 0x1f4   : > { %v922_v28 = vadd.f32 %v921_v26, %v920_v25 }
 0x1f6   : > { %v925_v29 = vadd.f32 %v924_v27, %v922_v28 }
 0x1f8   : > { %926 = vst [vmem:[%s390_s26] sm:$0x1] %v925_v29 }
 0x1f9   : > { %1181 = shalt.err (!%p1178_p7)
}
 0x1fa   : > { %s1182_s23 = scalar_lea.hbm %s938_s10, 16  ;;  %s1186_s25 = scalar_lea.hbm %s1516_s9, 32 }
 0x1fb   : > { %p1183_p10 = scmp.ne.s32.totalorder %s938_s10, %s1182_s23  ;;  %p1187_p13 = scmp.lt.s32.totalorder %s938_s10, %s1516_s9 }
 0x1fc   : > { %p1188_p0 = scmp.lt.s32.totalorder %s1186_s25, %s1182_s23 }
 0x1fd   : > { %p1184_p11 = pnand %p1183_p10, %p1324_p6 }
 0x1fe   : > { %p1189_p1 = por %p1188_p0, %p1187_p13 }
 0x1ff   : > { %p1185_p12 = pneg %p1184_p11 }
 0x201   : > { %p1190_p9 = pnand %p1189_p1, %p1185_p12 }
 0x203   : > { %1193 = shalt.err (!%p1190_p9)
}
 0x204   : > { %1113 = dma.vmem_to_hbm [thread:$0]  (%p1324_p6), %s941_s27, 16, %s938_s10, %s928_s15  }
 0x205 PF: > { %s952_s30 = sand.u32 1, %s1216_s11   ;;  %p1520_p2 = scmp.ge.s32.totalorder %s1228_s14, 2 }
 0x206   : > { %s953_s17 = scalar_lea.sflag [#allocation5], %s952_s30 }
 0x207   : > { %p1116_p3 = pnand %p1520_p2, %p1328_p8 }
 0x209   : > { %p1117_p4 = pneg %p1116_p3 }
 0x20b   : > { %1211 = dma.done.wait (%p1117_p4), %s953_s17, 16  }
 0x20c   : > { %1213 = vsyncadd (%p1117_p4), %s953_s17, 4294967280  ;;  %p20_p9 = scmp.ge.s32.totalorder %s1310_s16, 4   ;;  %s1521_s11 = smov %s1220_s12 }
 0x20d   : > { %s1522_s12 = smov %s1224_s13  ;;  %s1523_s13 = smov %s1322_s19 }
 0x20e   : > { %s1524_s14 = smov %s1310_s16  ;;  %22 = sbr.rel (!%p20_p9) target bundleno = 5 (0x5), region = 140 }
 0x213   :  { %957 = vsyncpa [#allocation5], 1 }
 0x214   :  { %959 = vsyncpa [#allocation5 + $0x1], 1 }

</bundles_post_ra>
